<compile_context>
chip_gen: v5e
topology: v5e:2x2
jax: 0.10.0
libtpu: 0.0.40
codegen_flags: <defaults>
</compile_context>

<pallas_src>
import jax
import jax.numpy as jnp
from jax import lax
from jax.experimental import pallas as pl
from jax.experimental.pallas import tpu as pltpu

_SUBLANE = 8                      # f32 sublane packing
_LANE = 128                       # lane width
_F32_BYTES = 4
_PT_MAX = 2048                    # lane-tile cap (diminishing returns past 512-1024)
_REG_ACC_BUDGET = 128 * 1024      # ~half the 256 KiB vreg file for the deferred acc
_MIB = 1024 * 1024


def _round_up(x, m):
    return ((x + m - 1) // m) * m


def _tpu_hw():
    """(tile_budget_bytes, vmem_limit_bytes, multi_core) derived per generation."""
    try:
        cap = int(pltpu.get_tpu_info().vmem_capacity_bytes)
    except Exception:
        cap = 64 * _MIB                       # conservative (v7x-sized) default
    if cap >= 100 * _MIB:                     # v5e / v6e: 128 MiB VMEM, single TC
        return 64 * _MIB, min(96 * _MIB, cap - 16 * _MIB), False
    # v7x-class: 64 MiB VMEM per TensorCore, 2 TCs per chip (megacore)
    return 32 * _MIB, min(48 * _MIB, max(cap - 16 * _MIB, 32 * _MIB)), True


def _plan_tiles(N, OC, CK, P):
    """Pick lane tile PT, OC tile TOC and padded sizes that fit VMEM + vregs."""
    tile_budget, vmem_limit, multi_core = _tpu_hw()
    CKp = _round_up(CK, _SUBLANE)
    OC8 = _round_up(OC, _SUBLANE)             # full-sublane (unmasked) output stores
    P128 = _round_up(P, _LANE)

    pt_cands = list(range(min(P128, _PT_MAX), 0, -_LANE))
    oc_cands = [OC8] + [t for t in (128, 64, 32, 16, 8) if t < OC8]

    def tile_bytes(pt, toc):
        # double-buffered x + w + bias + out blocks (all f32)
        return _F32_BYTES * pt * (N * CKp + toc * CKp + toc + N * toc)

    chosen = None
    for PT in pt_cands:                       # prefer the largest lane tile
        for TOC in oc_cands:                  # then the largest OC tile
            # deferred-reduce accumulator (TOC, 8, PT) must stay in registers
            if TOC * _SUBLANE * PT * _F32_BYTES > _REG_ACC_BUDGET:
                continue
            if 2 * tile_bytes(PT, TOC) <= tile_budget:
                chosen = (PT, TOC)
                break
        if chosen is not None:
            break
    if chosen is None:                        # smallest tiles; verify the hard limit
        chosen = (_LANE, _SUBLANE)
        if 2 * tile_bytes(*chosen) > vmem_limit:
            # TODO(synk): tile the batch axis (extra grid dim) for huge N*CK.
            raise ValueError(
                "LocallyConnected2d: minimal tile plan exceeds the VMEM limit")
    PT, TOC = chosen
    OCp = _round_up(OC8, TOC)

    # v7x megacore (2 TCs): make sure there are >= 2 parallel grid steps.
    if multi_core and (_round_up(P, PT) // PT) * (OCp // TOC) == 1:
        if P128 >= 2 * _LANE:
            PT = _round_up(-(-P // 2), _LANE)        # split the spatial axis
        elif TOC >= 2 * _SUBLANE:
            TOC //= 2                                # otherwise split the oc axis
            OCp = _round_up(OC8, TOC)

    Pp = _round_up(P, PT)
    return dict(CKp=CKp, Pp=Pp, PT=PT, TOC=TOC, OCp=OCp, vmem_limit=vmem_limit)


def pack_lc2d_weight(weight, plan):
    """(1, OC, C, OH, OW, K) -> padded (OCp, C*K, Pp); call once per model."""
    _, OC, C, OH, OW, K = weight.shape
    P, CK = OH * OW, C * K
    w_k = jnp.transpose(weight[0], (0, 1, 4, 2, 3)).reshape(OC, CK, P)
    return jnp.pad(w_k, ((0, plan["OCp"] - OC),
                         (0, plan["CKp"] - CK),
                         (0, plan["Pp"] - P)))


def pack_lc2d_bias(bias, plan):
    """(1, OC, OH, OW) -> padded (OCp, Pp), or None."""
    if bias is None:
        return None
    _, OC, OH, OW = bias.shape
    P = OH * OW
    b_k = bias[0].reshape(OC, P)
    return jnp.pad(b_k, ((0, plan["OCp"] - OC), (0, plan["Pp"] - P)))


def _make_lc2d_kernel(n_batch, ck_chunks, chunk, has_bias, fuse_batch):
    def kernel(*refs):
        if has_bias:
            x_ref, w_ref, b_ref, o_ref = refs
        else:
            x_ref, w_ref, o_ref = refs
            b_ref = None
        toc, pt = o_ref.shape[1], o_ref.shape[2]
        bias_f32 = b_ref[...].astype(jnp.float32) if has_bias else None
        unroll_ck = ck_chunks <= 8

        if fuse_batch:
            # CK-chunk loop outermost: each weight chunk is read from VMEM
            # exactly once (not once per batch element).  Raw products are
            # accumulated into per-batch (TOC, 8, PT) f32 register accumulators
            # (pure VPU mul+add); the cross-sublane (XLU) reduce runs once
            # after the loop instead of once per chunk.
            def ck_body(c, accs):
                off = pl.multiple_of(c * chunk, chunk)
                wc = w_ref[:, pl.ds(off, chunk), :].astype(jnp.float32)   # (TOC,8,PT)
                return tuple(
                    accs[n]
                    + wc * x_ref[pl.ds(n, 1), pl.ds(off, chunk), :].astype(jnp.float32)
                    for n in range(n_batch))

            init = tuple(jnp.zeros((toc, chunk, pt), jnp.float32)
                         for _ in range(n_batch))
            accs = lax.fori_loop(0, ck_chunks, ck_body, init, unroll=unroll_ck)
            for n in range(n_batch):
                res = jnp.sum(accs[n], axis=1)                             # (TOC, PT)
                if has_bias:
                    res = res + bias_f32
                o_ref[pl.ds(n, 1), :, :] = res[None].astype(o_ref.dtype)
        else:
            # Large-batch fallback: batch loop outer (weight chunks re-read
            # from VMEM per batch element), deferred reduce still applies and
            # the planner guarantees the per-batch accumulator fits in vregs.
            def batch_body(n, carry):
                def ck_body(c, acc):
                    off = pl.multiple_of(c * chunk, chunk)
                    wc = w_ref[:, pl.ds(off, chunk), :].astype(jnp.float32)
                    xc = x_ref[pl.ds(n, 1), pl.ds(off, chunk), :].astype(jnp.float32)
                    return acc + wc * xc                                   # (TOC,8,PT)

                acc = lax.fori_loop(0, ck_chunks, ck_body,
                                    jnp.zeros((toc, chunk, pt), jnp.float32),
                                    unroll=unroll_ck)
                res = jnp.sum(acc, axis=1)                                 # (TOC, PT)
                if has_bias:
                    res = res + bias_f32
                o_ref[pl.ds(n, 1), :, :] = res[None].astype(o_ref.dtype)
                return carry

            lax.fori_loop(0, n_batch, batch_body, 0, unroll=(n_batch <= 4))

    return kernel


def lc2d_forward(x, w_packed, b_packed, plan, *, out_channels, kernel_size, stride):
    """x: (N, C, H, W); w_packed/b_packed from pack_lc2d_*; returns (N, OC, OH, OW)."""
    N, C, H, W = x.shape
    kh = kw = kernel_size
    dh = dw = stride
    oh = (H - kh) // dh + 1
    ow = (W - kw) // dw + 1
    P = oh * ow
    CK = C * kh * kw
    CKp, Pp, PT, TOC, OCp = (plan[k] for k in ("CKp", "Pp", "PT", "TOC", "OCp"))

    # im2col directly in the kernel's (N, C*K, P) layout in a single pass.
    # TODO(synk): fetch the kh*kw shifted windows inside the kernel from HBM
    # (memory_space=pl.ANY + strided pl.ds reads) to avoid this K-fold
    # materialization of the input stream.
    patches = jnp.stack(
        [x[:, :, a:a + dh * oh:dh, b:b + dw * ow:dw]
         for a in range(kh) for b in range(kw)], axis=2)        # (N, C, K, oh, ow)
    x_k = patches.reshape(N, CK, P)
    x_k = jnp.pad(x_k, ((0, 0), (0, CKp - CK), (0, Pp - P)))

    num_p = Pp // PT
    num_oc = OCp // TOC
    ck_chunks = CKp // _SUBLANE
    has_bias = b_packed is not None
    # combined-batch path only if all N accumulators fit ~half the vreg file
    fuse_batch = N * TOC * _SUBLANE * PT * _F32_BYTES <= _REG_ACC_BUDGET

    kernel = _make_lc2d_kernel(N, ck_chunks, _SUBLANE, has_bias, fuse_batch)

    in_specs = [
        pl.BlockSpec((N, CKp, PT), lambda p, oc: (0, 0, p)),      # x: reused across oc
        pl.BlockSpec((TOC, CKp, PT), lambda p, oc: (oc, 0, p)),   # w: streamed once
    ]
    args = [x_k, w_packed]
    if has_bias:
        in_specs.append(pl.BlockSpec((TOC, PT), lambda p, oc: (oc, p)))
        args.append(b_packed)

    out = pl.pallas_call(
        kernel,
        out_shape=jax.ShapeDtypeStruct((N, OCp, Pp), x.dtype),
        grid_spec=pltpu.PrefetchScalarGridSpec(
            num_scalar_prefetch=0,
            # oc innermost: x block index (0,0,p) is unchanged across oc steps
            # (no re-DMA); every weight tile is streamed exactly once.
            grid=(num_p, num_oc),
            in_specs=in_specs,
            out_specs=pl.BlockSpec((N, TOC, PT), lambda p, oc: (0, oc, p)),
        ),
        compiler_params=pltpu.CompilerParams(
            dimension_semantics=("parallel", "parallel"),
            vmem_limit_bytes=plan["vmem_limit"]),
    )(*args)

    if OCp == out_channels and Pp == P:        # already tile-aligned: no de-pad copy
        return out.reshape(N, out_channels, oh, ow)
    return out[:, :out_channels, :P].reshape(N, out_channels, oh, ow)


def _reference(x, weight, bias, kernel_size, stride):
    kh = kw = kernel_size
    dh = dw = stride
    N, C, H, W = x.shape
    oh = (H - kh) // dh + 1
    ow = (W - kw) // dw + 1
    patches = jnp.stack(
        [x[:, :, a:a + dh * oh:dh, b:b + dw * ow:dw]
         for a in range(kh) for b in range(kw)], axis=-1)       # (N, C, oh, ow, K)
    out = jnp.sum(patches[:, None] * weight, axis=(2, -1))      # (N, OC, oh, ow)
    if bias is not None:
        out = out + bias
    return out


if __name__ == "__main__":
    key = jax.random.PRNGKey(0)
    k_x, k_w, k_b = jax.random.split(key, 3)

    in_channels, out_channels = 4, 4
    kernel_size, stride = 3, 1
    H = W = 18                                 # -> output_size = 16 x 16
    output_size = (H - kernel_size) // stride + 1
    N = 2

    x = jax.random.normal(k_x, (N, in_channels, H, W), dtype=jnp.float32)
    weight = jax.random.normal(
        k_w, (1, out_channels, in_channels, output_size, output_size,
              kernel_size ** 2), dtype=jnp.float32)
    bias = jax.random.normal(
        k_b, (1, out_channels, output_size, output_size), dtype=jnp.float32)

    CK = in_channels * kernel_size ** 2
    P = output_size * output_size
    plan = _plan_tiles(N, out_channels, CK, P)

    # Weight/bias layout packing hoisted out of the per-call forward path.
    w_packed = pack_lc2d_weight(weight, plan)
    b_packed = pack_lc2d_bias(bias, plan)

    fwd_nobias = jax.jit(lambda xx: lc2d_forward(
        xx, w_packed, None, plan,
        out_channels=out_channels, kernel_size=kernel_size, stride=stride))
    fwd_bias = jax.jit(lambda xx: lc2d_forward(
        xx, w_packed, b_packed, plan,
        out_channels=out_channels, kernel_size=kernel_size, stride=stride))

    # Module default (bias=False)
    out = jax.block_until_ready(fwd_nobias(x))
    ref = _reference(x, weight, None, kernel_size, stride)
    assert out.shape == (N, out_channels, output_size, output_size)
    assert jnp.allclose(out, ref, atol=1e-4, rtol=1e-4)

    # bias=True variant (fused bias add inside the kernel)
    out_b = jax.block_until_ready(fwd_bias(x))
    ref_b = _reference(x, weight, bias, kernel_size, stride)
    assert jnp.allclose(out_b, ref_b, atol=1e-4, rtol=1e-4)

    print("KERNEL_OK")
</pallas_src>

<mosaic_0001>
module attributes {stable_mosaic.version = 11 : i64} {
  func.func @kernel(%arg0: i32, %arg1: i32, %arg2: memref<2x40x128xf32, #tpu.memory_space<vmem>>, %arg3: memref<8x40x128xf32, #tpu.memory_space<vmem>>, %arg4: memref<2x8x128xf32, #tpu.memory_space<vmem>>) attributes {dimension_semantics = [#tpu.dimension_semantics<parallel>, #tpu.dimension_semantics<parallel>], iteration_bounds = array<i64: 2, 1>, scalar_prefetch = 0 : i64, scratch_operands = 0 : i64, tpu.core_type = #tpu.core_type<tc>, window_params = [{transform_indices = @transform_0, window_bounds = array<i64: 2, 40, 128>}, {transform_indices = @transform_1, window_bounds = array<i64: 8, 40, 128>}, {transform_indices = @transform_2, window_bounds = array<i64: 2, 8, 128>}]} {
    %cst = arith.constant 0.000000e+00 : f32
    %0 = vector.broadcast %cst : f32 to vector<8x8x128xf32>
    %cst_0 = arith.constant 0.000000e+00 : f32
    %1 = vector.broadcast %cst_0 : f32 to vector<8x8x128xf32>
    %c0_i32 = arith.constant 0 : i32
    %c8_i32 = arith.constant 8 : i32
    %2 = arith.muli %c0_i32, %c8_i32 : i32
    %3 = tpu.assume_multiple %2, 8 : i32
    %c0 = arith.constant 0 : index
    %4 = arith.index_cast %3 : i32 to index
    %c0_1 = arith.constant 0 : index
    %5 = vector.load %arg3[%c0, %4, %c0_1] : memref<8x40x128xf32, #tpu.memory_space<vmem>>, vector<8x8x128xf32>
    %c0_2 = arith.constant 0 : index
    %6 = arith.index_cast %3 : i32 to index
    %c0_3 = arith.constant 0 : index
    %7 = vector.load %arg2[%c0_2, %6, %c0_3] : memref<2x40x128xf32, #tpu.memory_space<vmem>>, vector<1x8x128xf32>
    %8 = vector.broadcast %7 : vector<1x8x128xf32> to vector<8x8x128xf32>
    %9 = arith.mulf %5, %8 : vector<8x8x128xf32>
    %10 = arith.addf %0, %9 : vector<8x8x128xf32>
    %c1 = arith.constant 1 : index
    %11 = arith.index_cast %3 : i32 to index
    %c0_4 = arith.constant 0 : index
    %12 = vector.load %arg2[%c1, %11, %c0_4] : memref<2x40x128xf32, #tpu.memory_space<vmem>>, vector<1x8x128xf32>
    %13 = vector.broadcast %12 : vector<1x8x128xf32> to vector<8x8x128xf32>
    %14 = arith.mulf %5, %13 : vector<8x8x128xf32>
    %15 = arith.addf %1, %14 : vector<8x8x128xf32>
    %c1_i32 = arith.constant 1 : i32
    %c8_i32_5 = arith.constant 8 : i32
    %16 = arith.muli %c1_i32, %c8_i32_5 : i32
    %17 = tpu.assume_multiple %16, 8 : i32
    %c0_6 = arith.constant 0 : index
    %18 = arith.index_cast %17 : i32 to index
    %c0_7 = arith.constant 0 : index
    %19 = vector.load %arg3[%c0_6, %18, %c0_7] : memref<8x40x128xf32, #tpu.memory_space<vmem>>, vector<8x8x128xf32>
    %c0_8 = arith.constant 0 : index
    %20 = arith.index_cast %17 : i32 to index
    %c0_9 = arith.constant 0 : index
    %21 = vector.load %arg2[%c0_8, %20, %c0_9] : memref<2x40x128xf32, #tpu.memory_space<vmem>>, vector<1x8x128xf32>
    %22 = vector.broadcast %21 : vector<1x8x128xf32> to vector<8x8x128xf32>
    %23 = arith.mulf %19, %22 : vector<8x8x128xf32>
    %24 = arith.addf %10, %23 : vector<8x8x128xf32>
    %c1_10 = arith.constant 1 : index
    %25 = arith.index_cast %17 : i32 to index
    %c0_11 = arith.constant 0 : index
    %26 = vector.load %arg2[%c1_10, %25, %c0_11] : memref<2x40x128xf32, #tpu.memory_space<vmem>>, vector<1x8x128xf32>
    %27 = vector.broadcast %26 : vector<1x8x128xf32> to vector<8x8x128xf32>
    %28 = arith.mulf %19, %27 : vector<8x8x128xf32>
    %29 = arith.addf %15, %28 : vector<8x8x128xf32>
    %c2_i32 = arith.constant 2 : i32
    %c8_i32_12 = arith.constant 8 : i32
    %30 = arith.muli %c2_i32, %c8_i32_12 : i32
    %31 = tpu.assume_multiple %30, 8 : i32
    %c0_13 = arith.constant 0 : index
    %32 = arith.index_cast %31 : i32 to index
    %c0_14 = arith.constant 0 : index
    %33 = vector.load %arg3[%c0_13, %32, %c0_14] : memref<8x40x128xf32, #tpu.memory_space<vmem>>, vector<8x8x128xf32>
    %c0_15 = arith.constant 0 : index
    %34 = arith.index_cast %31 : i32 to index
    %c0_16 = arith.constant 0 : index
    %35 = vector.load %arg2[%c0_15, %34, %c0_16] : memref<2x40x128xf32, #tpu.memory_space<vmem>>, vector<1x8x128xf32>
    %36 = vector.broadcast %35 : vector<1x8x128xf32> to vector<8x8x128xf32>
    %37 = arith.mulf %33, %36 : vector<8x8x128xf32>
    %38 = arith.addf %24, %37 : vector<8x8x128xf32>
    %c1_17 = arith.constant 1 : index
    %39 = arith.index_cast %31 : i32 to index
    %c0_18 = arith.constant 0 : index
    %40 = vector.load %arg2[%c1_17, %39, %c0_18] : memref<2x40x128xf32, #tpu.memory_space<vmem>>, vector<1x8x128xf32>
    %41 = vector.broadcast %40 : vector<1x8x128xf32> to vector<8x8x128xf32>
    %42 = arith.mulf %33, %41 : vector<8x8x128xf32>
    %43 = arith.addf %29, %42 : vector<8x8x128xf32>
    %c3_i32 = arith.constant 3 : i32
    %c8_i32_19 = arith.constant 8 : i32
    %44 = arith.muli %c3_i32, %c8_i32_19 : i32
    %45 = tpu.assume_multiple %44, 8 : i32
    %c0_20 = arith.constant 0 : index
    %46 = arith.index_cast %45 : i32 to index
    %c0_21 = arith.constant 0 : index
    %47 = vector.load %arg3[%c0_20, %46, %c0_21] : memref<8x40x128xf32, #tpu.memory_space<vmem>>, vector<8x8x128xf32>
    %c0_22 = arith.constant 0 : index
    %48 = arith.index_cast %45 : i32 to index
    %c0_23 = arith.constant 0 : index
    %49 = vector.load %arg2[%c0_22, %48, %c0_23] : memref<2x40x128xf32, #tpu.memory_space<vmem>>, vector<1x8x128xf32>
    %50 = vector.broadcast %49 : vector<1x8x128xf32> to vector<8x8x128xf32>
    %51 = arith.mulf %47, %50 : vector<8x8x128xf32>
    %52 = arith.addf %38, %51 : vector<8x8x128xf32>
    %c1_24 = arith.constant 1 : index
    %53 = arith.index_cast %45 : i32 to index
    %c0_25 = arith.constant 0 : index
    %54 = vector.load %arg2[%c1_24, %53, %c0_25] : memref<2x40x128xf32, #tpu.memory_space<vmem>>, vector<1x8x128xf32>
    %55 = vector.broadcast %54 : vector<1x8x128xf32> to vector<8x8x128xf32>
    %56 = arith.mulf %47, %55 : vector<8x8x128xf32>
    %57 = arith.addf %43, %56 : vector<8x8x128xf32>
    %c4_i32 = arith.constant 4 : i32
    %c8_i32_26 = arith.constant 8 : i32
    %58 = arith.muli %c4_i32, %c8_i32_26 : i32
    %59 = tpu.assume_multiple %58, 8 : i32
    %c0_27 = arith.constant 0 : index
    %60 = arith.index_cast %59 : i32 to index
    %c0_28 = arith.constant 0 : index
    %61 = vector.load %arg3[%c0_27, %60, %c0_28] : memref<8x40x128xf32, #tpu.memory_space<vmem>>, vector<8x8x128xf32>
    %c0_29 = arith.constant 0 : index
    %62 = arith.index_cast %59 : i32 to index
    %c0_30 = arith.constant 0 : index
    %63 = vector.load %arg2[%c0_29, %62, %c0_30] : memref<2x40x128xf32, #tpu.memory_space<vmem>>, vector<1x8x128xf32>
    %64 = vector.broadcast %63 : vector<1x8x128xf32> to vector<8x8x128xf32>
    %65 = arith.mulf %61, %64 : vector<8x8x128xf32>
    %66 = arith.addf %52, %65 : vector<8x8x128xf32>
    %c1_31 = arith.constant 1 : index
    %67 = arith.index_cast %59 : i32 to index
    %c0_32 = arith.constant 0 : index
    %68 = vector.load %arg2[%c1_31, %67, %c0_32] : memref<2x40x128xf32, #tpu.memory_space<vmem>>, vector<1x8x128xf32>
    %69 = vector.broadcast %68 : vector<1x8x128xf32> to vector<8x8x128xf32>
    %70 = arith.mulf %61, %69 : vector<8x8x128xf32>
    %71 = arith.addf %57, %70 : vector<8x8x128xf32>
    %c5_i32 = arith.constant 5 : i32
    %cst_33 = arith.constant dense<0.000000e+00> : vector<8x128xf32>
    %72 = vector.multi_reduction <add>, %66, %cst_33 [1] : vector<8x8x128xf32> to vector<8x128xf32>
    %73 = vector.shape_cast %72 : vector<8x128xf32> to vector<1x8x128xf32>
    %c0_34 = arith.constant 0 : index
    %c0_35 = arith.constant 0 : index
    %c0_36 = arith.constant 0 : index
    %74 = vector.load %arg4[%c0_34, %c0_35, %c0_36] : memref<2x8x128xf32, #tpu.memory_space<vmem>>, vector<1x8x128xf32>
    tpu.vector_store %arg4[%c0_34, %c0_35, %c0_36], %73 {strides = array<i32>} : memref<2x8x128xf32, #tpu.memory_space<vmem>>, vector<1x8x128xf32>,
    %cst_37 = arith.constant dense<0.000000e+00> : vector<8x128xf32>
    %75 = vector.multi_reduction <add>, %71, %cst_37 [1] : vector<8x8x128xf32> to vector<8x128xf32>
    %76 = vector.shape_cast %75 : vector<8x128xf32> to vector<1x8x128xf32>
    %c1_38 = arith.constant 1 : index
    %c0_39 = arith.constant 0 : index
    %c0_40 = arith.constant 0 : index
    %77 = vector.load %arg4[%c1_38, %c0_39, %c0_40] : memref<2x8x128xf32, #tpu.memory_space<vmem>>, vector<1x8x128xf32>
    tpu.vector_store %arg4[%c1_38, %c0_39, %c0_40], %76 {strides = array<i32>} : memref<2x8x128xf32, #tpu.memory_space<vmem>>, vector<1x8x128xf32>,
    return
  }
  func.func @transform_0(%arg0: i32, %arg1: i32) -> (i32, i32, i32) {
    %c0_i32 = arith.constant 0 : i32
    %c0_i32_0 = arith.constant 0 : i32
    %c0_i32_1 = arith.constant 0 : i32
    return %c0_i32, %c0_i32_0, %arg0 : i32, i32, i32
  }
  func.func @transform_1(%arg0: i32, %arg1: i32) -> (i32, i32, i32) {
    %c0_i32 = arith.constant 0 : i32
    %c0_i32_0 = arith.constant 0 : i32
    return %arg1, %c0_i32, %arg0 : i32, i32, i32
  }
  func.func @transform_2(%arg0: i32, %arg1: i32) -> (i32, i32, i32) {
    %c0_i32 = arith.constant 0 : i32
    %c0_i32_0 = arith.constant 0 : i32
    return %c0_i32, %arg1, %arg0 : i32, i32, i32
  }
}

</mosaic_0001>

<bundles_post_ra>
// kernel: _lambda_.1
= control target key start
LH: loop header
LB: loop body
LE: loop exit
PB: predicated region body
PF: predicated region fallthrough
CT: control target
= control target key end

     0   :  { %s1099_s9 = smov 0   ;;  %s1101_s10 = smov 0   ;;  %s1379_s0 = inlined_call_operand.vmem [shape: f32[2,40,256], index: 0, kind: input, shape index: {}]   ;;  %s1380_s1 = inlined_call_operand.vmem [shape: f32[8,40,256], index: 1, kind: input, shape index: {}]   ;;  %s1381_s2 = inlined_call_operand.vmem [shape: f32[2,8,256], index: 2, kind: output, shape index: {}]  }
   0x1   :  { %s1103_s11 = smov 0   ;;  %s1105_s12 = smov 0  }
   0x2   :  { %s1107_s13 = smov 0  }
   0x3 LB: > { %s24_s14 = sadd.s32 1, %s1078_s12  ;;  %s946_s15 = sadd.s32 4294967295, %s1082_s13   ;;  %s1082_s13 = sphi %s1107_s13, %s12_s13   ;;  %s1078_s12 = sphi %s1105_s12, %s1387_s12   ;;  %s1074_s11 = sphi %s1103_s11, %s1386_s11   ;;  %s1070_s10 = sphi %s1101_s10, %s1385_s10   ;;  %s1066_s9 = sphi %s1099_s9, %s1384_s9  }
   0x4   : > { %p26_p0 = scmp.ge.s32.totalorder %s24_s14, 2  ;;  %p38_p1 = scmp.ne.s32.totalorder %s1070_s10, %s1066_s9 }
   0x5   : > { %p39_p2 = scmp.eq.s32.totalorder %s1082_s13, 0  ;;  %p98_p4 = scmp.eq.s32.totalorder %s946_s15, 1 }
   0x6   : > { %s1389_s14 = smov (%p26_p0, %s24_s14), 0  ;;  %s31_s18 = sadd.s32 1, %s1070_s10 }
   0x7   : > { %p1131_p3 = por %p39_p2, %p38_p1  ;;  %s28_s17 = ssub.s32 %s1078_s12, %s1389_s14 }
   0x8   : > { %p29_p5 = scmp.eq.s32.totalorder %s28_s17, 0  ;;  %p1138_p6 = por %p98_p4, %p38_p1 }
   0x9   : > { %p949_p7 = scmp.ge.s32.totalorder %s1082_s13, 2 }
   0xa   : > { %s1143_s20 = scalar_select %p29_p5, %s1070_s10, %s31_s18  }
   0xb   : > { %120 = sbr.rel (%p949_p7) target bundleno = 74 (0x4a), region = 16 }
  0x10   : > { %123 = sbr.rel (!%p1131_p3) target bundleno = 30 (0x1e), region = 20  ;;  %s125_s21 = sand.u32 (%p1131_p3), 1, %s1070_s10  }
  0x11   : > { %s950_s22 = sshll.u32 (%p1131_p3), %s1078_s12, 3  ;;  %s1000_s23 = smul.u32 (%p1131_p3), 80, %s125_s21 }
  0x12   : > { %s129_s26 = scalar_lea.vmem (%p1131_p3), %s1379_s0, %s950_s22 }
  0x13   : > { %v176_v0 = vld [vmem:[%s129_s26] sm:$0xff] (%p1131_p3)  ;;  %v178_v1 = vld [vmem:[%s129_s26 + $0x10] sm:$0xff] (%p1131_p3)  ;;  %s127_s27 = scalar_lea.vmem (%p1131_p3), [#allocation2], %s1000_s23 }
  0x14   : > { %v180_v2 = vld [vmem:[%s129_s26 + $0x20] sm:$0xff] (%p1131_p3)  ;;  %177 = vst [vmem:[%s127_s27] sm:$0xff] (%p1131_p3), %v176_v0  ;;  %v182_v3 = vld [vmem:[%s129_s26 + $0x30] sm:$0xff] (%p1131_p3) }
  0x15   : > { %179 = vst [vmem:[%s127_s27 + $0x8] sm:$0xff] %v178_v1  ;;  %v184_v4 = vld [vmem:[%s129_s26 + $0x40] sm:$0xff]  ;;  %v186_v5 = vld [vmem:[%s129_s26 + $0x50] sm:$0xff] }
  0x16   : > { %181 = vst [vmem:[%s127_s27 + $0x10] sm:$0xff] %v180_v2  ;;  %v188_v6 = vld [vmem:[%s129_s26 + $0x60] sm:$0xff]  ;;  %v190_v7 = vld [vmem:[%s129_s26 + $0x70] sm:$0xff] }
  0x17   : > { %183 = vst [vmem:[%s127_s27 + $0x18] sm:$0xff] %v182_v3  ;;  %v192_v8 = vld [vmem:[%s129_s26 + $0x80] sm:$0xff]  ;;  %v194_v9 = vld [vmem:[%s129_s26 + $0x90] sm:$0xff] }
  0x18   : > { %185 = vst [vmem:[%s127_s27 + $0x20] sm:$0xff] %v184_v4 }
  0x19   : > { %187 = vst [vmem:[%s127_s27 + $0x28] sm:$0xff] %v186_v5 }
  0x1a   : > { %189 = vst [vmem:[%s127_s27 + $0x30] sm:$0xff] %v188_v6 }
  0x1b   : > { %191 = vst [vmem:[%s127_s27 + $0x38] sm:$0xff] %v190_v7 }
  0x1c   : > { %193 = vst [vmem:[%s127_s27 + $0x40] sm:$0xff] %v192_v8 }
  0x1d   : > { %195 = vst [vmem:[%s127_s27 + $0x48] sm:$0xff] %v194_v9 }
  0x1e PF: > { %201 = sbr.rel (!%p1131_p3) target bundleno = 74 (0x4a), region = 58  ;;  %s203_s28 = sand.u32 (%p1131_p3), 1, %s1070_s10  }
  0x1f   : > { %s951_s29 = sshll.u32 (%p1131_p3), %s1078_s12, 3  ;;  %s1001_s30 = smul.u32 (%p1131_p3), 320, %s203_s28 }
  0x20   : > { %s1160_s5 = scalar_lea.vmem (%p1131_p3), %s1380_s1, %s951_s29 }
  0x21   : > { %v317_v10 = vld [vmem:[%s1160_s5] sm:$0xff] (%p1131_p3)  ;;  %v319_v11 = vld [vmem:[%s1160_s5 + $0x10] sm:$0xff] (%p1131_p3)  ;;  %s1165_s6 = scalar_lea.vmem (%p1131_p3), [#allocation3], %s1001_s30 }
  0x22   : > { %v321_v12 = vld [vmem:[%s1160_s5 + $0x20] sm:$0xff] (%p1131_p3)  ;;  %318 = vst [vmem:[%s1165_s6] sm:$0xff] (%p1131_p3), %v317_v10  ;;  %v323_v13 = vld [vmem:[%s1160_s5 + $0x30] sm:$0xff] (%p1131_p3) }
  0x23   : > { %320 = vst [vmem:[%s1165_s6 + $0x8] sm:$0xff] %v319_v11  ;;  %v325_v14 = vld [vmem:[%s1160_s5 + $0x40] sm:$0xff]  ;;  %v327_v15 = vld [vmem:[%s1160_s5 + $0x50] sm:$0xff] }
  0x24   : > { %322 = vst [vmem:[%s1165_s6 + $0x10] sm:$0xff] %v321_v12  ;;  %v329_v16 = vld [vmem:[%s1160_s5 + $0x60] sm:$0xff]  ;;  %v331_v17 = vld [vmem:[%s1160_s5 + $0x70] sm:$0xff] }
  0x25   : > { %324 = vst [vmem:[%s1165_s6 + $0x18] sm:$0xff] %v323_v13  ;;  %v333_v18 = vld [vmem:[%s1160_s5 + $0x80] sm:$0xff]  ;;  %v335_v19 = vld [vmem:[%s1160_s5 + $0x90] sm:$0xff] }
  0x26   : > { %326 = vst [vmem:[%s1165_s6 + $0x20] sm:$0xff] %v325_v14  ;;  %v337_v20 = vld [vmem:[%s1160_s5 + $0xa0] sm:$0xff]  ;;  %v339_v21 = vld [vmem:[%s1160_s5 + $0xb0] sm:$0xff] }
  0x27   : > { %328 = vst [vmem:[%s1165_s6 + $0x28] sm:$0xff] %v327_v15  ;;  %v341_v22 = vld [vmem:[%s1160_s5 + $0xc0] sm:$0xff]  ;;  %v343_v23 = vld [vmem:[%s1160_s5 + $0xd0] sm:$0xff] }
  0x28   : > { %330 = vst [vmem:[%s1165_s6 + $0x30] sm:$0xff] %v329_v16  ;;  %v345_v24 = vld [vmem:[%s1160_s5 + $0xe0] sm:$0xff]  ;;  %v347_v25 = vld [vmem:[%s1160_s5 + $0xf0] sm:$0xff] }
  0x29   : > { %332 = vst [vmem:[%s1165_s6 + $0x38] sm:$0xff] %v331_v17  ;;  %v349_v26 = vld [vmem:[%s1160_s5 + $0x100] sm:$0xff]  ;;  %v351_v27 = vld [vmem:[%s1160_s5 + $0x110] sm:$0xff] }
  0x2a   : > { %334 = vst [vmem:[%s1165_s6 + $0x40] sm:$0xff] %v333_v18  ;;  %v353_v28 = vld [vmem:[%s1160_s5 + $0x120] sm:$0xff]  ;;  %v355_v29 = vld [vmem:[%s1160_s5 + $0x130] sm:$0xff] }
  0x2b   : > { %336 = vst [vmem:[%s1165_s6 + $0x48] sm:$0xff] %v335_v19  ;;  %v357_v30 = vld [vmem:[%s1160_s5 + $0x140] sm:$0xff]  ;;  %v359_v31 = vld [vmem:[%s1160_s5 + $0x150] sm:$0xff] }
  0x2c   : > { %338 = vst [vmem:[%s1165_s6 + $0x50] sm:$0xff] %v337_v20  ;;  %v361_v32 = vld [vmem:[%s1160_s5 + $0x160] sm:$0xff]  ;;  %v363_v33 = vld [vmem:[%s1160_s5 + $0x170] sm:$0xff] }
  0x2d   : > { %340 = vst [vmem:[%s1165_s6 + $0x58] sm:$0xff] %v339_v21  ;;  %v365_v34 = vld [vmem:[%s1160_s5 + $0x180] sm:$0xff]  ;;  %v367_v35 = vld [vmem:[%s1160_s5 + $0x190] sm:$0xff] }
  0x2e   : > { %342 = vst [vmem:[%s1165_s6 + $0x60] sm:$0xff] %v341_v22  ;;  %v369_v36 = vld [vmem:[%s1160_s5 + $0x1a0] sm:$0xff]  ;;  %v371_v37 = vld [vmem:[%s1160_s5 + $0x1b0] sm:$0xff] }
  0x2f   : > { %344 = vst [vmem:[%s1165_s6 + $0x68] sm:$0xff] %v343_v23  ;;  %v373_v38 = vld [vmem:[%s1160_s5 + $0x1c0] sm:$0xff]  ;;  %v375_v39 = vld [vmem:[%s1160_s5 + $0x1d0] sm:$0xff] }
  0x30   : > { %346 = vst [vmem:[%s1165_s6 + $0x70] sm:$0xff] %v345_v24  ;;  %v377_v40 = vld [vmem:[%s1160_s5 + $0x1e0] sm:$0xff]  ;;  %v379_v41 = vld [vmem:[%s1160_s5 + $0x1f0] sm:$0xff] }
  0x31   : > { %348 = vst [vmem:[%s1165_s6 + $0x78] sm:$0xff] %v347_v25  ;;  %v381_v42 = vld [vmem:[%s1160_s5 + $0x200] sm:$0xff]  ;;  %v383_v43 = vld [vmem:[%s1160_s5 + $0x210] sm:$0xff] }
  0x32   : > { %350 = vst [vmem:[%s1165_s6 + $0x80] sm:$0xff] %v349_v26  ;;  %v385_v44 = vld [vmem:[%s1160_s5 + $0x220] sm:$0xff]  ;;  %v387_v45 = vld [vmem:[%s1160_s5 + $0x230] sm:$0xff] }
  0x33   : > { %352 = vst [vmem:[%s1165_s6 + $0x88] sm:$0xff] %v351_v27  ;;  %v389_v46 = vld [vmem:[%s1160_s5 + $0x240] sm:$0xff]  ;;  %v391_v47 = vld [vmem:[%s1160_s5 + $0x250] sm:$0xff] }
  0x34   : > { %354 = vst [vmem:[%s1165_s6 + $0x90] sm:$0xff] %v353_v28  ;;  %v393_v48 = vld [vmem:[%s1160_s5 + $0x260] sm:$0xff]  ;;  %v395_v49 = vld [vmem:[%s1160_s5 + $0x270] sm:$0xff] }
  0x35   : > { %356 = vst [vmem:[%s1165_s6 + $0x98] sm:$0xff] %v355_v29 }
  0x36   : > { %358 = vst [vmem:[%s1165_s6 + $0xa0] sm:$0xff] %v357_v30 }
  0x37   : > { %360 = vst [vmem:[%s1165_s6 + $0xa8] sm:$0xff] %v359_v31 }
  0x38   : > { %362 = vst [vmem:[%s1165_s6 + $0xb0] sm:$0xff] %v361_v32 }
  0x39   : > { %364 = vst [vmem:[%s1165_s6 + $0xb8] sm:$0xff] %v363_v33 }
  0x3a   : > { %366 = vst [vmem:[%s1165_s6 + $0xc0] sm:$0xff] %v365_v34 }
  0x3b   : > { %368 = vst [vmem:[%s1165_s6 + $0xc8] sm:$0xff] %v367_v35 }
  0x3c   : > { %370 = vst [vmem:[%s1165_s6 + $0xd0] sm:$0xff] %v369_v36 }
  0x3d   : > { %372 = vst [vmem:[%s1165_s6 + $0xd8] sm:$0xff] %v371_v37 }
  0x3e   : > { %374 = vst [vmem:[%s1165_s6 + $0xe0] sm:$0xff] %v373_v38 }
  0x3f   : > { %376 = vst [vmem:[%s1165_s6 + $0xe8] sm:$0xff] %v375_v39 }
  0x40   : > { %378 = vst [vmem:[%s1165_s6 + $0xf0] sm:$0xff] %v377_v40 }
  0x41   : > { %380 = vst [vmem:[%s1165_s6 + $0xf8] sm:$0xff] %v379_v41 }
  0x42   : > { %382 = vst [vmem:[%s1165_s6 + $0x100] sm:$0xff] %v381_v42 }
  0x43   : > { %384 = vst [vmem:[%s1165_s6 + $0x108] sm:$0xff] %v383_v43 }
  0x44   : > { %386 = vst [vmem:[%s1165_s6 + $0x110] sm:$0xff] %v385_v44 }
  0x45   : > { %388 = vst [vmem:[%s1165_s6 + $0x118] sm:$0xff] %v387_v45 }
  0x46   : > { %390 = vst [vmem:[%s1165_s6 + $0x120] sm:$0xff] %v389_v46 }
  0x47   : > { %392 = vst [vmem:[%s1165_s6 + $0x128] sm:$0xff] %v391_v47 }
  0x48   : > { %394 = vst [vmem:[%s1165_s6 + $0x130] sm:$0xff] %v393_v48 }
  0x49   : > { %396 = vst [vmem:[%s1165_s6 + $0x138] sm:$0xff] %v395_v49 }
  0x4a PF: > { %p952_p8 = scmp.ge.s32.totalorder %s1082_s13, 1  ;;  %p401_p9 = scmp.lt.s32.totalorder %s1082_s13, 3 }
  0x4c   : > { %p402_p10 = pnand %p952_p8, %p401_p9 }
  0x4d   : > { %s1247_s7 = sand.u32 (!%p402_p10), 1, %s1066_s9  }
  0x4e   : > { %405 = sbr.rel (%p402_p10) target bundleno = 163 (0xa3), region = 96  ;;  %s953_s9 = sshll.u32 (!%p402_p10), %s1247_s7, 4 }
  0x4f   : > { %s1002_s8 = smul.u32 (!%p402_p10), 80, %s1247_s7  ;;  %s1341_s18 = scalar_lea.vmem (!%p402_p10), [#allocation4], %s953_s9 }
  0x50   : > { %s1003_s15 = smul.u32 (!%p402_p10), 320, %s1247_s7 }
  0x51   : > { %s1251_s16 = scalar_lea.vmem (!%p402_p10), [#allocation2], %s1002_s8 }
  0x52   : > { %s1255_s17 = scalar_lea.vmem (!%p402_p10), [#allocation3], %s1003_s15 }
  0x53   : > { %v448_v50 = vld [vmem:[%s1251_s16] sm:$0xff]  ;;  %v954_v51 = vld [vmem:[%s1251_s16 + $0x28] sm:$0xff]  ;;  %v964_v29 = vld [vmem:[%s1251_s16 + $0x30] sm:$0xff]  ;;  %vm724_vm0 = vcmask 1041409   ;;  %vm726_vm1 = vcmask 1042434   ;;  %vm728_vm2 = vcmask 1043459  }
  0x54   : > { %v440_v52 = vld [vmem:[%s1255_s17] sm:$0xff]  ;;  %v441_v53 = vld [vmem:[%s1255_s17 + $0x28] sm:$0xff]  ;;  %v442_v54 = vld [vmem:[%s1255_s17 + $0x50] sm:$0xff]  ;;  %vm730_vm3 = vcmask 1044484   ;;  %vm732_vm4 = vcmask 1045509   ;;  %vm734_vm5 = vcmask 1046534  }
  0x55   : > { %v963_v55 = vld [vmem:[%s1251_s16 + $0x8] sm:$0xff]  ;;  %v444_v57 = vld [vmem:[%s1255_s17 + $0xa0] sm:$0xff]  ;;  %v449_v59 = vmul.f32 %v448_v50, %v440_v52  ;;  %v450_v60 = vmul.f32 %v448_v50, %v441_v53  ;;  %v451_v61 = vmul.f32 %v448_v50, %v442_v54  ;;  %v468_v62 = vmul.f32 %v954_v51, %v440_v52  ;;  %v446_v63 = vld [vmem:[%s1255_s17 + $0xf0] sm:$0xff]  ;;  %s997_s21 = sshll.u32 (%p1138_p6), %s1074_s11, 3 }
  0x56   : > { %v443_v56 = vld [vmem:[%s1255_s17 + $0x78] sm:$0xff]  ;;  %v445_v58 = vld [vmem:[%s1255_s17 + $0xc8] sm:$0xff]  ;;  %v453_v2 = vmul.f32 %v448_v50, %v444_v57  ;;  %v469_v4 = vmul.f32 %v954_v51, %v441_v53  ;;  %v455_v6 = vmul.f32 %v448_v50, %v446_v63  ;;  %v470_v8 = vmul.f32 %v954_v51, %v442_v54  ;;  %v956_v10 = vld [vmem:[%s1255_s17 + $0x30] sm:$0xff]  ;;  %s816_s24 = scalar_lea.vmem (%p1138_p6), %s1381_s2, %s997_s21 }
  0x57   : > { %v447_v0 = vld [vmem:[%s1255_s17 + $0x118] sm:$0xff]  ;;  %v452_v1 = vmul.f32 %v448_v50, %v443_v56  ;;  %v454_v3 = vmul.f32 %v448_v50, %v445_v58  ;;  %v955_v5 = vld [vmem:[%s1255_s17 + $0x8] sm:$0xff]  ;;  %v471_v9 = vmul.f32 %v954_v51, %v443_v56  ;;  %v958_v12 = vld [vmem:[%s1255_s17 + $0x80] sm:$0xff]  ;;  %v472_v13 = vmul.f32 %v954_v51, %v444_v57 }
  0x58   : > { %v456_v7 = vmul.f32 %v448_v50, %v447_v0  ;;  %v957_v11 = vld [vmem:[%s1255_s17 + $0x58] sm:$0xff]  ;;  %v473_v14 = vmul.f32 %v954_v51, %v445_v58  ;;  %v474_v15 = vmul.f32 %v954_v51, %v446_v63  ;;  %v475_v16 = vmul.f32 %v954_v51, %v447_v0  ;;  %v959_v17 = vld [vmem:[%s1255_s17 + $0xa8] sm:$0xff]  ;;  %v960_v18 = vld [vmem:[%s1255_s17 + $0xd0] sm:$0xff] }
  0x59   : > { %v961_v19 = vld [vmem:[%s1255_s17 + $0xf8] sm:$0xff]  ;;  %v962_v20 = vld [vmem:[%s1255_s17 + $0x120] sm:$0xff]  ;;  %v495_v21 = vmul.f32 %v963_v55, %v955_v5  ;;  %v496_v22 = vmul.f32 %v963_v55, %v956_v10  ;;  %v497_v23 = vmul.f32 %v963_v55, %v957_v11  ;;  %v498_v24 = vmul.f32 %v963_v55, %v958_v12  ;;  %v965_v42 = vld [vmem:[%s1255_s17 + $0x10] sm:$0xff] }
  0x5a   : > { %v499_v25 = vmul.f32 %v963_v55, %v959_v17  ;;  %v500_v26 = vmul.f32 %v963_v55, %v960_v18  ;;  %v501_v27 = vmul.f32 %v963_v55, %v961_v19  ;;  %v502_v28 = vmul.f32 %v963_v55, %v962_v20  ;;  %v966_v43 = vld [vmem:[%s1255_s17 + $0x38] sm:$0xff]  ;;  %v967_v44 = vld [vmem:[%s1255_s17 + $0x60] sm:$0xff]  ;;  %v968_v49 = vld [vmem:[%s1255_s17 + $0x88] sm:$0xff] }
  0x5b   : > { %v503_v30 = vadd.f32 %v495_v21, %v449_v59  ;;  %v504_v31 = vadd.f32 %v496_v22, %v450_v60  ;;  %v505_v32 = vadd.f32 %v497_v23, %v451_v61  ;;  %v506_v33 = vadd.f32 %v498_v24, %v452_v1  ;;  %v969_v50 = vld [vmem:[%s1255_s17 + $0xb0] sm:$0xff]  ;;  %v970_v56 = vld [vmem:[%s1255_s17 + $0xd8] sm:$0xff]  ;;  %v971_v57 = vld [vmem:[%s1255_s17 + $0x100] sm:$0xff] }
  0x5c   : > { %v507_v34 = vadd.f32 %v499_v25, %v453_v2  ;;  %v508_v35 = vadd.f32 %v500_v26, %v454_v3  ;;  %v509_v36 = vadd.f32 %v501_v27, %v455_v6  ;;  %v510_v37 = vadd.f32 %v502_v28, %v456_v7  ;;  %v973_v51 = vld [vmem:[%s1251_s16 + $0x10] sm:$0xff]  ;;  %v972_v58 = vld [vmem:[%s1255_s17 + $0x128] sm:$0xff]  ;;  %v979_v28 = vld [vmem:[%s1255_s17 + $0xb8] sm:$0xff] }
  0x5d   : > { %v514_v38 = vmul.f32 %v964_v29, %v955_v5  ;;  %v515_v39 = vmul.f32 %v964_v29, %v956_v10  ;;  %v516_v40 = vmul.f32 %v964_v29, %v957_v11  ;;  %v517_v41 = vmul.f32 %v964_v29, %v958_v12  ;;  %v976_v21 = vld [vmem:[%s1255_s17 + $0x40] sm:$0xff]  ;;  %v977_v22 = vld [vmem:[%s1255_s17 + $0x68] sm:$0xff]  ;;  %v978_v27 = vld [vmem:[%s1255_s17 + $0x90] sm:$0xff] }
  0x5e   : > { %v518_v45 = vmul.f32 %v964_v29, %v959_v17  ;;  %v519_v46 = vmul.f32 %v964_v29, %v960_v18  ;;  %v520_v47 = vmul.f32 %v964_v29, %v961_v19  ;;  %v521_v48 = vmul.f32 %v964_v29, %v962_v20  ;;  %v975_v20 = vld [vmem:[%s1255_s17 + $0x18] sm:$0xff] }
  0x5f   : > { %v522_v52 = vadd.f32 %v514_v38, %v468_v62  ;;  %v523_v53 = vadd.f32 %v515_v39, %v469_v4  ;;  %v524_v54 = vadd.f32 %v516_v40, %v470_v8  ;;  %v525_v55 = vadd.f32 %v517_v41, %v471_v9  ;;  %v974_v4 = vld [vmem:[%s1251_s16 + $0x38] sm:$0xff] }
  0x60   : > { %v526_v59 = vadd.f32 %v518_v45, %v472_v13  ;;  %v527_v60 = vadd.f32 %v519_v46, %v473_v14  ;;  %v528_v61 = vadd.f32 %v520_v47, %v474_v15  ;;  %v529_v63 = vadd.f32 %v521_v48, %v475_v16  ;;  %v983_v29 = vld [vmem:[%s1251_s16 + $0x18] sm:$0xff] }
  0x61   : > { %v541_v0 = vmul.f32 %v973_v51, %v965_v42  ;;  %v542_v1 = vmul.f32 %v973_v51, %v966_v43  ;;  %v543_v2 = vmul.f32 %v973_v51, %v967_v44  ;;  %v544_v3 = vmul.f32 %v973_v51, %v968_v49 }
  0x62   : > { %v545_v5 = vmul.f32 %v973_v51, %v969_v50  ;;  %v546_v6 = vmul.f32 %v973_v51, %v970_v56  ;;  %v547_v7 = vmul.f32 %v973_v51, %v971_v57  ;;  %v548_v62 = vmul.f32 %v973_v51, %v972_v58 }
  0x63   : > { %v549_v8 = vadd.f32 %v541_v0, %v503_v30  ;;  %v550_v9 = vadd.f32 %v542_v1, %v504_v31  ;;  %v551_v10 = vadd.f32 %v543_v2, %v505_v32  ;;  %v552_v11 = vadd.f32 %v544_v3, %v506_v33  ;;  %v986_v0 = vld [vmem:[%s1255_s17 + $0x48] sm:$0xff]  ;;  %v987_v1 = vld [vmem:[%s1255_s17 + $0x70] sm:$0xff] }
  0x64   : > { %v553_v12 = vadd.f32 %v545_v5, %v507_v34  ;;  %v554_v13 = vadd.f32 %v546_v6, %v508_v35  ;;  %v555_v14 = vadd.f32 %v547_v7, %v509_v36  ;;  %v556_v15 = vadd.f32 %v548_v62, %v510_v37  ;;  %v980_v34 = vld [vmem:[%s1255_s17 + $0xe0] sm:$0xff]  ;;  %v981_v35 = vld [vmem:[%s1255_s17 + $0x108] sm:$0xff]  ;;  %v982_v36 = vld [vmem:[%s1255_s17 + $0x130] sm:$0xff] }
  0x65   : > { %v560_v16 = vmul.f32 %v974_v4, %v965_v42  ;;  %v561_v17 = vmul.f32 %v974_v4, %v966_v43  ;;  %v562_v18 = vmul.f32 %v974_v4, %v967_v44  ;;  %v563_v19 = vmul.f32 %v974_v4, %v968_v49  ;;  %v984_v49 = vld [vmem:[%s1251_s16 + $0x40] sm:$0xff]  ;;  %v988_v7 = vld [vmem:[%s1255_s17 + $0x98] sm:$0xff] }
  0x66   : > { %v564_v23 = vmul.f32 %v974_v4, %v969_v50  ;;  %v565_v24 = vmul.f32 %v974_v4, %v970_v56  ;;  %v566_v25 = vmul.f32 %v974_v4, %v971_v57  ;;  %v567_v26 = vmul.f32 %v974_v4, %v972_v58  ;;  %v989_v62 = vld [vmem:[%s1255_s17 + $0xc0] sm:$0xff] }
  0x67   : > { %v568_v30 = vadd.f32 %v560_v16, %v522_v52  ;;  %v569_v31 = vadd.f32 %v561_v17, %v523_v53  ;;  %v570_v32 = vadd.f32 %v562_v18, %v524_v54  ;;  %v571_v33 = vadd.f32 %v563_v19, %v525_v55  ;;  %v993_v4 = vld [vmem:[%s1251_s16 + $0x20] sm:$0xff] }
  0x68   : > { %v572_v37 = vadd.f32 %v564_v23, %v526_v59  ;;  %v573_v38 = vadd.f32 %v565_v24, %v527_v60  ;;  %v574_v39 = vadd.f32 %v566_v25, %v528_v61  ;;  %v575_v40 = vadd.f32 %v567_v26, %v529_v63  ;;  %v985_v63 = vld [vmem:[%s1255_s17 + $0x20] sm:$0xff] }
  0x69   : > { %v587_v41 = vmul.f32 %v983_v29, %v975_v20  ;;  %v588_v42 = vmul.f32 %v983_v29, %v976_v21  ;;  %v589_v43 = vmul.f32 %v983_v29, %v977_v22  ;;  %v590_v44 = vmul.f32 %v983_v29, %v978_v27 }
  0x6a   : > { %v591_v45 = vmul.f32 %v983_v29, %v979_v28  ;;  %v592_v46 = vmul.f32 %v983_v29, %v980_v34  ;;  %v593_v47 = vmul.f32 %v983_v29, %v981_v35  ;;  %v594_v48 = vmul.f32 %v983_v29, %v982_v36 }
  0x6b   : > { %v595_v50 = vadd.f32 %v587_v41, %v549_v8  ;;  %v596_v51 = vadd.f32 %v588_v42, %v550_v9  ;;  %v597_v52 = vadd.f32 %v589_v43, %v551_v10  ;;  %v598_v53 = vadd.f32 %v590_v44, %v552_v11 }
  0x6c   : > { %v599_v54 = vadd.f32 %v591_v45, %v553_v12  ;;  %v600_v55 = vadd.f32 %v592_v46, %v554_v13  ;;  %v601_v56 = vadd.f32 %v593_v47, %v555_v14  ;;  %v602_v57 = vadd.f32 %v594_v48, %v556_v15  ;;  %v990_v12 = vld [vmem:[%s1255_s17 + $0xe8] sm:$0xff]  ;;  %v991_v13 = vld [vmem:[%s1255_s17 + $0x110] sm:$0xff]  ;;  %v992_v14 = vld [vmem:[%s1255_s17 + $0x138] sm:$0xff] }
  0x6d   : > { %v606_v58 = vmul.f32 %v984_v49, %v975_v20  ;;  %v607_v59 = vmul.f32 %v984_v49, %v976_v21  ;;  %v608_v60 = vmul.f32 %v984_v49, %v977_v22  ;;  %v609_v61 = vmul.f32 %v984_v49, %v978_v27  ;;  %v994_v27 = vld [vmem:[%s1251_s16 + $0x48] sm:$0xff] }
  0x6e   : > { %v610_v2 = vmul.f32 %v984_v49, %v979_v28  ;;  %v611_v3 = vmul.f32 %v984_v49, %v980_v34  ;;  %v612_v5 = vmul.f32 %v984_v49, %v981_v35  ;;  %v613_v6 = vmul.f32 %v984_v49, %v982_v36 }
  0x6f   : > { %v614_v8 = vadd.f32 %v606_v58, %v568_v30  ;;  %v615_v9 = vadd.f32 %v607_v59, %v569_v31  ;;  %v616_v10 = vadd.f32 %v608_v60, %v570_v32  ;;  %v617_v11 = vadd.f32 %v609_v61, %v571_v33 }
  0x70   : > { %v618_v15 = vadd.f32 %v610_v2, %v572_v37  ;;  %v619_v16 = vadd.f32 %v611_v3, %v573_v38  ;;  %v620_v17 = vadd.f32 %v612_v5, %v574_v39  ;;  %v621_v18 = vadd.f32 %v613_v6, %v575_v40 }
  0x71   : > { %v633_v19 = vmul.f32 %v993_v4, %v985_v63  ;;  %v634_v20 = vmul.f32 %v993_v4, %v986_v0  ;;  %v635_v21 = vmul.f32 %v993_v4, %v987_v1  ;;  %v636_v22 = vmul.f32 %v993_v4, %v988_v7 }
  0x72   : > { %v637_v23 = vmul.f32 %v993_v4, %v989_v62  ;;  %v638_v24 = vmul.f32 %v993_v4, %v990_v12  ;;  %v639_v25 = vmul.f32 %v993_v4, %v991_v13  ;;  %v640_v26 = vmul.f32 %v993_v4, %v992_v14 }
  0x73   : > { %v641_v28 = vadd.f32 %v633_v19, %v595_v50  ;;  %v642_v29 = vadd.f32 %v634_v20, %v596_v51  ;;  %v643_v30 = vadd.f32 %v635_v21, %v597_v52  ;;  %v644_v31 = vadd.f32 %v636_v22, %v598_v53 }
  0x74   : > { %v645_v32 = vadd.f32 %v637_v23, %v599_v54  ;;  %v646_v33 = vadd.f32 %v638_v24, %v600_v55  ;;  %v647_v34 = vadd.f32 %v639_v25, %v601_v56  ;;  %v648_v35 = vadd.f32 %v640_v26, %v602_v57 }
  0x75   : > { %v652_v36 = vmul.f32 %v994_v27, %v985_v63  ;;  %v653_v37 = vmul.f32 %v994_v27, %v986_v0  ;;  %v654_v38 = vmul.f32 %v994_v27, %v987_v1  ;;  %v655_v39 = vmul.f32 %v994_v27, %v988_v7 }
  0x76   : > { %v656_v40 = vmul.f32 %v994_v27, %v989_v62  ;;  %v657_v41 = vmul.f32 %v994_v27, %v990_v12  ;;  %v658_v42 = vmul.f32 %v994_v27, %v991_v13  ;;  %v659_v43 = vmul.f32 %v994_v27, %v992_v14 }
  0x77   : > { %v1305_v44 = vadd.f32 %v652_v36, %v614_v8  ;;  %v1307_v45 = vadd.f32 %v653_v37, %v615_v9  ;;  %v1309_v46 = vadd.f32 %v654_v38, %v616_v10  ;;  %v1311_v47 = vadd.f32 %v655_v39, %v617_v11 }
  0x78   : > { %v1313_v48 = vadd.f32 %v656_v40, %v618_v15  ;;  %v1315_v49 = vadd.f32 %v657_v41, %v619_v16  ;;  %v1317_v50 = vadd.f32 %v658_v42, %v620_v17  ;;  %v1319_v51 = vadd.f32 %v659_v43, %v621_v18 }
  0x79   : > { %v668_v52 = vrot.slane %v641_v28, 4  ;;  %v674_v53 = vrot.slane %v642_v29, 4  ;;  %v680_v54 = vrot.slane %v643_v30, 4  ;;  %v686_v55 = vrot.slane %v644_v31, 4 }
  0x7a   : > { %v692_v56 = vrot.slane %v645_v32, 4  ;;  %v698_v57 = vrot.slane %v646_v33, 4  ;;  %v704_v58 = vrot.slane %v647_v34, 4  ;;  %v710_v59 = vrot.slane %v648_v35, 4 }
  0x7b   : > { %v669_v60 = vadd.f32 %v668_v52, %v641_v28  ;;  %v675_v61 = vadd.f32 %v674_v53, %v642_v29  ;;  %v681_v63 = vadd.f32 %v680_v54, %v643_v30  ;;  %v687_v0 = vadd.f32 %v686_v55, %v644_v31 }
  0x7c   : > { %v693_v1 = vadd.f32 %v692_v56, %v645_v32  ;;  %v699_v2 = vadd.f32 %v698_v57, %v646_v33  ;;  %v705_v3 = vadd.f32 %v704_v58, %v647_v34  ;;  %v711_v5 = vadd.f32 %v710_v59, %v648_v35 }
  0x7d   : > { %v670_v6 = vrot.slane %v669_v60, 2  ;;  %v676_v7 = vrot.slane %v675_v61, 2  ;;  %v682_v62 = vrot.slane %v681_v63, 2  ;;  %v688_v4 = vrot.slane %v687_v0, 2 }
  0x7e   : > { %v694_v8 = vrot.slane %v693_v1, 2  ;;  %v700_v9 = vrot.slane %v699_v2, 2  ;;  %v706_v10 = vrot.slane %v705_v3, 2  ;;  %v712_v11 = vrot.slane %v711_v5, 2 }
  0x7f   : > { %v671_v12 = vadd.f32 %v670_v6, %v669_v60  ;;  %v677_v13 = vadd.f32 %v676_v7, %v675_v61  ;;  %v683_v14 = vadd.f32 %v682_v62, %v681_v63  ;;  %v689_v15 = vadd.f32 %v688_v4, %v687_v0 }
  0x80   : > { %v695_v16 = vadd.f32 %v694_v8, %v693_v1  ;;  %v701_v17 = vadd.f32 %v700_v9, %v699_v2  ;;  %v707_v18 = vadd.f32 %v706_v10, %v705_v3  ;;  %v713_v19 = vadd.f32 %v712_v11, %v711_v5 }
  0x81   : > { %v672_v20 = vrot.slane %v671_v12, 1  ;;  %v678_v21 = vrot.slane %v677_v13, 1  ;;  %v684_v22 = vrot.slane %v683_v14, 1  ;;  %v690_v23 = vrot.slane %v689_v15, 1 }
  0x82   : > { %v696_v24 = vrot.slane %v695_v16, 1  ;;  %v702_v25 = vrot.slane %v701_v17, 1  ;;  %v708_v26 = vrot.slane %v707_v18, 1  ;;  %v714_v27 = vrot.slane %v713_v19, 1 }
  0x83   : > { %v673_v28 = vadd.f32 %v672_v20, %v671_v12  ;;  %v679_v29 = vadd.f32 %v678_v21, %v677_v13  ;;  %v685_v30 = vadd.f32 %v684_v22, %v683_v14  ;;  %v691_v31 = vadd.f32 %v690_v23, %v689_v15 }
  0x84   : > { %v697_v32 = vadd.f32 %v696_v24, %v695_v16  ;;  %v703_v33 = vadd.f32 %v702_v25, %v701_v17  ;;  %v709_v34 = vadd.f32 %v708_v26, %v707_v18  ;;  %v715_v35 = vadd.f32 %v714_v27, %v713_v19 }
  0x85   : > { %v725_v36 = vsel %vm724_vm0, %v679_v29, %v673_v28  ;;  %vm736_vm6 = vcmask 1047559   ;;  %v740_v38 = vrot.slane %v1305_v44, 4  ;;  %v746_v39 = vrot.slane %v1307_v45, 4 }
  0x86   : > { %v727_v37 = vsel %vm726_vm1, %v685_v30, %v725_v36  ;;  %v752_v40 = vrot.slane %v1309_v46, 4  ;;  %v758_v42 = vrot.slane %v1311_v47, 4  ;;  %v764_v43 = vrot.slane %v1313_v48, 4 }
  0x87   : > { %v729_v41 = vsel %vm728_vm2, %v691_v31, %v727_v37  ;;  %v770_v52 = vrot.slane %v1315_v49, 4  ;;  %v741_v54 = vadd.f32 %v740_v38, %v1305_v44  ;;  %v747_v55 = vadd.f32 %v746_v39, %v1307_v45 }
  0x88   : > { %v731_v53 = vsel %vm730_vm3, %v697_v32, %v729_v41  ;;  %v753_v56 = vadd.f32 %v752_v40, %v1309_v46  ;;  %v759_v58 = vadd.f32 %v758_v42, %v1311_v47  ;;  %v765_v59 = vadd.f32 %v764_v43, %v1313_v48 }
  0x89   : > { %v733_v57 = vsel %vm732_vm4, %v703_v33, %v731_v53  ;;  %v771_v60 = vadd.f32 %v770_v52, %v1315_v49  ;;  %v742_v63 = vrot.slane %v741_v54, 2  ;;  %v748_v0 = vrot.slane %v747_v55, 2 }
  0x8a   : > { %v735_v61 = vsel %vm734_vm5, %v709_v34, %v733_v57  ;;  %v754_v1 = vrot.slane %v753_v56, 2  ;;  %v760_v44 = vrot.slane %v759_v58, 2  ;;  %v766_v3 = vrot.slane %v765_v59, 2 }
  0x8b   : > { %v737_v2 = vsel %vm736_vm6, %v715_v35, %v735_v61  ;;  %v772_v45 = vrot.slane %v771_v60, 2  ;;  %v743_v46 = vadd.f32 %v742_v63, %v741_v54  ;;  %v749_v47 = vadd.f32 %v748_v0, %v747_v55 }
  0x8c   : > { %739 = vst [vmem:[%s1341_s18] sm:$0xff] %v737_v2  ;;  %v755_v5 = vadd.f32 %v754_v1, %v753_v56  ;;  %v776_v48 = vrot.slane %v1317_v50, 4  ;;  %v761_v49 = vadd.f32 %v760_v44, %v759_v58  ;;  %v767_v6 = vadd.f32 %v766_v3, %v765_v59 }
  0x8d   : > { %v773_v7 = vadd.f32 %v772_v45, %v771_v60  ;;  %v782_v62 = vrot.slane %v1319_v51, 4  ;;  %v744_v4 = vrot.slane %v743_v46, 1  ;;  %v750_v8 = vrot.slane %v749_v47, 1 }
  0x8e   : > { %v756_v9 = vrot.slane %v755_v5, 1  ;;  %v777_v10 = vadd.f32 %v776_v48, %v1317_v50  ;;  %v762_v11 = vrot.slane %v761_v49, 1  ;;  %v768_v12 = vrot.slane %v767_v6, 1 }
  0x8f   : > { %v774_v13 = vrot.slane %v773_v7, 1  ;;  %v783_v14 = vadd.f32 %v782_v62, %v1319_v51  ;;  %v745_v15 = vadd.f32 %v744_v4, %v743_v46  ;;  %v751_v16 = vadd.f32 %v750_v8, %v749_v47 }
  0x90   : > { %v757_v17 = vadd.f32 %v756_v9, %v755_v5  ;;  %v778_v18 = vrot.slane %v777_v10, 2  ;;  %v763_v19 = vadd.f32 %v762_v11, %v761_v49  ;;  %v769_v20 = vadd.f32 %v768_v12, %v767_v6 }
  0x91   : > { %v784_v21 = vrot.slane %v783_v14, 2  ;;  %v775_v22 = vadd.f32 %v774_v13, %v773_v7  ;;  %v796_v24 = vsel %vm724_vm0, %v751_v16, %v745_v15 }
  0x92   : > { %v779_v23 = vadd.f32 %v778_v18, %v777_v10  ;;  %v797_v50 = vsel %vm726_vm1, %v757_v17, %v796_v24 }
  0x93   : > { %v785_v25 = vadd.f32 %v784_v21, %v783_v14  ;;  %v798_v27 = vsel %vm728_vm2, %v763_v19, %v797_v50  ;;  %v847_v34 = vld [vmem:[%s1341_s18] sm:$0xff] (%p1138_p6) }
  0x94   : > { %v780_v26 = vrot.slane %v779_v23, 1  ;;  %v799_v51 = vsel %vm730_vm3, %v769_v20, %v798_v27  ;;  %848 = vst [vmem:[%s816_s24] sm:$0xff] (%p1138_p6), %v847_v34 }
  0x95   : > { %v786_v28 = vrot.slane %v785_v25, 1  ;;  %v800_v30 = vsel %vm732_vm4, %v775_v22, %v799_v51 }
  0x96   : > { %v781_v29 = vadd.f32 %v780_v26, %v779_v23  ;;  %812 = sbr.rel (!%p1138_p6) target bundleno = 163 (0xa3), region = 108 }
  0x97   : > { %v787_v31 = vadd.f32 %v786_v28, %v785_v25 }
  0x98   : > { %v801_v32 = vsel %vm734_vm5, %v781_v29, %v800_v30 }
  0x99   : > { %v802_v33 = vsel %vm736_vm6, %v787_v31, %v801_v32 }
  0x9a   : > { %995 = vst [vmem:[%s1341_s18 + $0x8] sm:$0xff] %v802_v33 }
  0xa1   : > { %v849_v35 = vld [vmem:[%s1341_s18 + $0x8] sm:$0xff] }
  0xa2   : > { %850 = vst [vmem:[%s816_s24 + $0x10] sm:$0xff] %v849_v35 }
  0xa3 PF: > { %s12_s13 = sadd.s32 1, %s1082_s13   ;;  %s1384_s9 = smov %s1070_s10 }
  0xa4   : > { %p9_p11 = scmp.ge.s32.totalorder %s12_s13, 4   ;;  %s1385_s10 = smov %s1143_s20 }
  0xa5   : > { %s1386_s11 = smov %s1078_s12  ;;  %s1387_s12 = smov %s1389_s14 }
  0xa6   :  { %11 = sbr.rel (!%p9_p11) target bundleno = 3 (0x3), region = 199 }

</bundles_post_ra>
